<compile_context>
chip_gen: v5e
topology: v5e:2x2
jax: 0.10.0
libtpu: 0.0.40
codegen_flags: <defaults>
</compile_context>

<pallas_src>
import functools
import math

import jax
import jax.numpy as jnp
from jax.experimental import pallas as pl
from jax.experimental.pallas import tpu as pltpu


def make_positional_encoding_table(seq_len: int, d_model: int,
                                   dtype=jnp.float32) -> jax.Array:
    """Builds the [seq_len, 1, d_model] sin/cos table (plain-JAX glue)."""
    position = jnp.arange(seq_len, dtype=jnp.float32)[:, None]          # [S, 1]
    div_term = jnp.exp(
        jnp.arange(0, d_model, 2, dtype=jnp.float32)
        * (-math.log(10000.0) / d_model))                               # [D/2]
    pe = jnp.zeros((seq_len, 1, d_model), dtype=jnp.float32)
    pe = pe.at[:, 0, 0::2].set(jnp.sin(position * div_term))
    pe = pe.at[:, 0, 1::2].set(jnp.cos(position * div_term))
    return pe.astype(dtype)


# ---------------------------------------------------------------------------
# Portable counter-based dropout bits (fallback when the HW PRNG is not
# available, e.g. interpret mode).  5 ARX rounds, int32 add/xor/shift only.
# ---------------------------------------------------------------------------
_GOLD = 0x7F4A7C15  # positive 31-bit odd constant (keeps int32 literals positive)


def _rotl32(v, amt: int):
    """32-bit rotate-left on int32 vectors (logical right shift emulated)."""
    right = jnp.bitwise_and(jnp.right_shift(v, 32 - amt),
                            jnp.int32((1 << amt) - 1))
    return jnp.bitwise_or(jnp.left_shift(v, amt), right)


def _dropout_bits(rows, cols, seed):
    """Threefry-style 5-round ARX hash: (row, col, seed) -> uniform int32 bits."""
    k0 = seed
    k1 = jnp.bitwise_xor(seed, jnp.int32(_GOLD))
    x0 = rows + k0
    x1 = cols + k1
    for amt in (13, 15, 26):
        x0 = x0 + x1
        x1 = jnp.bitwise_xor(_rotl32(x1, amt), x0)
    x0 = x0 + k1                       # mid-point key injection
    x1 = x1 + k0 + jnp.int32(1)
    for amt in (17, 29):
        x0 = x0 + x1
        x1 = jnp.bitwise_xor(_rotl32(x1, amt), x0)
    return jnp.bitwise_xor(x0, _rotl32(x1, 7))


# ---------------------------------------------------------------------------
# Kernel
# ---------------------------------------------------------------------------
def _pe_dropout_kernel(seed_ref, x_ref, pe_ref, o_ref, *, n_rep, d_model,
                       bcast_concat, tile_rows, keep_thr, scale,
                       apply_dropout, use_hw_prng):
    if apply_dropout and use_hw_prng:
        # Per-tile stream: distinct, cheap, generated on dedicated PRNG HW.
        pltpu.prng_seed(seed_ref[0] + pl.program_id(0))

    pe_tile = pe_ref[...]                               # (tile_rows, d_model)

    if bcast_concat and n_rep > 1:
        # Unaligned d_model fallback (d_model % 128 != 0, batch > 1):
        # broadcast across batch once in VMEM (pe's HBM stream stays at 1/B of
        # x's traffic), then a single full-width add/store.
        slices = [(0, jnp.concatenate([pe_tile] * n_rep, axis=-1))]
        width = n_rep * d_model
    else:
        # Lane-aligned path: static per-batch slices at 128-lane boundaries are
        # free; no full-width repeated-pe temporary is ever materialized.
        slices = [(b * d_model, pe_tile) for b in range(n_rep)]
        width = d_model

    for lo, pe in slices:
        y = x_ref[:, lo:lo + width] + pe                # x.dtype add

        if apply_dropout:
            if use_hw_prng:
                bits = pltpu.prng_random_bits(y.shape)
                if bits.dtype != jnp.int32:
                    bits = pltpu.bitcast(bits, jnp.int32)
            else:
                rows = (jax.lax.broadcasted_iota(jnp.int32, y.shape, 0)
                        + pl.program_id(0) * tile_rows)       # global seq row
                cols = (jax.lax.broadcasted_iota(jnp.int32, y.shape, 1)
                        + lo)                                  # global lane col
                bits = _dropout_bits(rows, cols, seed_ref[0])
            # Integer-threshold compare in signed int32 domain: P(keep) = 1 - p.
            keep = bits >= jnp.int32(keep_thr)
            y = jnp.where(keep, y * jnp.asarray(scale, y.dtype),
                          jnp.zeros_like(y))

        o_ref[:, lo:lo + width] = y.astype(o_ref.dtype)


# ---------------------------------------------------------------------------
# Wrapper
# ---------------------------------------------------------------------------
def positional_encoding_forward(x: jax.Array, pe_table: jax.Array, *,
                                p: float = 0.1, training: bool = True,
                                seed: int = 0, tile_seq: int | None = None,
                                donate_x: bool = False,
                                use_hw_prng: bool | None = None) -> jax.Array:
    """Equivalent of PositionalEncoding.forward(x).

    x:        [seq_len, batch, d_model]
    pe_table: [max_seq_len, 1, d_model]  (pe_table[:seq_len] is used)
    """
    assert 0.0 <= p < 1.0, "dropout prob must be in [0, 1)"
    S, B, D = x.shape
    BD = B * D
    dtype = x.dtype
    itemsize = dtype.itemsize

    if use_hw_prng is None:
        # HW PRNG only lowers on real TPU backends (no interpret/CPU lowering).
        use_hw_prng = jax.default_backend() == "tpu"

    # pe streamed as [S, D] (1/B of x's HBM traffic), cast to activation dtype
    # on the host so the in-kernel add stays in x.dtype.
    pe2d = pe_table[:S, 0, :].astype(dtype)                  # [S, D]
    bcast_concat = (B > 1) and (D % 128 != 0)

    x2d = x.reshape(S, BD)       # contiguous collapse -> metadata-only reshape

    # ---- VMEM-aware tile selection + explicit VMEM limit ----
    try:
        vmem_cap = pltpu.get_tpu_info().vmem_capacity_bytes
    except Exception:            # no TPU visible -> assume v7x worst case
        vmem_cap = 64 * 1024 * 1024
    # 128 MiB parts (v5e/v6e): 64 MiB limit, 32 MiB block budget.
    # 64 MiB parts (v7x/TC):   32 MiB limit, 16 MiB block budget.
    vmem_limit = int(min(vmem_cap // 2, 64 * 1024 * 1024))
    block_budget = int(min(vmem_limit // 2, 32 * 1024 * 1024))

    x_row = BD * itemsize
    pe_row = D * itemsize
    bcast_row = x_row if bcast_concat else 0          # in-kernel broadcast temp
    per_row = 4 * x_row + 2 * pe_row + bcast_row      # 2x-buffered in/out + pe

    # Dtype-aware sublane multiple: 8 rows f32, 16 bf16, 32 int8/fp8.
    row_mult = max(8, 8 * (4 // max(itemsize, 1)))

    if tile_seq is None:
        t = max(block_budget // per_row, 1)
        # Guarantee >= 4 seq tiles so the "parallel" axis can shard across
        # v7x's two TensorCores and per-step overhead stays amortized.
        min_tiles = 4
        cap = max(pl.cdiv(S, min_tiles), row_mult)
        t = min(t, cap)
        t = max((t // row_mult) * row_mult, min(row_mult, S))
        tile_seq = t
    tile_seq = int(min(tile_seq, S))

    # Dropout threshold mapped to signed int32 domain: P(bits >= thr) = 1 - p.
    thr_u32 = min(max(int(round(p * 4294967296.0)), 0), 4294967295)
    keep_thr = thr_u32 - 2147483648

    apply_dropout = bool(training) and p > 0.0
    kernel = functools.partial(
        _pe_dropout_kernel, n_rep=B, d_model=D, bcast_concat=bcast_concat,
        tile_rows=tile_seq, keep_thr=keep_thr,
        scale=(1.0 / (1.0 - p)) if p > 0.0 else 1.0,
        apply_dropout=apply_dropout, use_hw_prng=bool(use_hw_prng))

    grid_spec = pltpu.PrefetchScalarGridSpec(
        num_scalar_prefetch=1,                   # seed lives in SMEM
        grid=(pl.cdiv(S, tile_seq),),
        in_specs=[
            pl.BlockSpec((tile_seq, BD), lambda i, seed: (i, 0)),
            pl.BlockSpec((tile_seq, D), lambda i, seed: (i, 0)),
        ],
        out_specs=pl.BlockSpec((tile_seq, BD), lambda i, seed: (i, 0)),
    )

    cost = pl.CostEstimate(
        flops=S * BD,                                    # one add per element
        transcendentals=0,
        bytes_accessed=(2 * S * BD + S * D) * itemsize)  # x read + out + pe

    seed_arr = jnp.array([seed & 0x7FFFFFFF], dtype=jnp.int32)

    out2d = pl.pallas_call(
        kernel,
        out_shape=jax.ShapeDtypeStruct((S, BD), dtype),
        grid_spec=grid_spec,
        compiler_params=pltpu.CompilerParams(
            dimension_semantics=("parallel",),   # seq tiles are independent
            vmem_limit_bytes=vmem_limit),
        cost_estimate=cost,
        # Optional HBM reuse of x for the output (caller must not reuse x):
        # operand 1 is x2d (operand 0 is the prefetched seed).
        input_output_aliases=({1: 0} if donate_x else {}),
    )(seed_arr, x2d, pe2d)

    return out2d.reshape(S, B, D)


if __name__ == "__main__":
    # Small shapes consistent with the module: [seq_len, batch, d_model]
    SEQ_LEN, BATCH, D_MODEL = 8, 2, 32
    MAX_SEQ_LEN = 64          # synthetic stand-in for the module's 5000
    P = 0.1

    key = jax.random.PRNGKey(0)
    x = jax.random.normal(key, (SEQ_LEN, BATCH, D_MODEL), dtype=jnp.float32)
    pe_table = make_positional_encoding_table(MAX_SEQ_LEN, D_MODEL)
    ref = x + pe_table[:SEQ_LEN]

    # 1) Eval mode (dropout = identity) vs pure-JAX reference.
    y_eval = jax.block_until_ready(
        positional_encoding_forward(x, pe_table, p=P, training=False))
    assert y_eval.shape == x.shape and y_eval.dtype == x.dtype
    assert jnp.allclose(y_eval, ref, atol=1e-6, rtol=1e-6)

    # 2) bf16 activations: pe cast to bf16 on the host, add stays in bf16.
    xb = x.astype(jnp.bfloat16)
    y_bf16 = jax.block_until_ready(
        positional_encoding_forward(xb, pe_table, p=P, training=False))
    assert y_bf16.dtype == jnp.bfloat16
    assert jnp.allclose(y_bf16.astype(jnp.float32), ref, atol=5e-2, rtol=5e-2)

    # 3) Training mode: every element is either 0 or ref * 1/(1-p).
    y_tr = jax.block_until_ready(
        positional_encoding_forward(x, pe_table, p=P, training=True, seed=123))
    scaled_ref = ref * jnp.float32(1.0 / (1.0 - P))
    kept = jnp.isclose(y_tr, scaled_ref, rtol=1e-5, atol=1e-5)
    dropped = (y_tr == 0.0)
    assert bool(jnp.all(kept | dropped))
    drop_frac = float(jnp.mean(dropped.astype(jnp.float32)))
    assert 0.005 < drop_frac < 0.35, drop_frac   # loose sanity check around p=0.1

    # 4) Dropout is deterministic for a fixed seed (same call twice).
    y_a = jax.block_until_ready(positional_encoding_forward(
        x, pe_table, p=P, training=True, seed=7))
    y_b = jax.block_until_ready(positional_encoding_forward(
        x, pe_table, p=P, training=True, seed=7))
    assert bool(jnp.array_equal(y_a, y_b))

    # 5) Lane-aligned path (d_model % 128 == 0): per-batch-slice kernel,
    #    multi-tile grid; check eval correctness and training kept-or-dropped.
    S5, B5, D5 = 16, 2, 128
    x5 = jax.random.normal(jax.random.PRNGKey(1), (S5, B5, D5),
                           dtype=jnp.float32)
    pe_table5 = make_positional_encoding_table(MAX_SEQ_LEN, D5)
    ref5 = x5 + pe_table5[:S5]
    y5 = jax.block_until_ready(
        positional_encoding_forward(x5, pe_table5, p=P, training=False,
                                    tile_seq=8))
    assert jnp.allclose(y5, ref5, atol=1e-6, rtol=1e-6)
    y5_tr = jax.block_until_ready(
        positional_encoding_forward(x5, pe_table5, p=P, training=True,
                                    seed=42, tile_seq=8))
    kept5 = jnp.isclose(y5_tr, ref5 * jnp.float32(1.0 / (1.0 - P)),
                        rtol=1e-5, atol=1e-5)
    assert bool(jnp.all(kept5 | (y5_tr == 0.0)))

    print("KERNEL_OK")
</pallas_src>

<mosaic_0001>
module attributes {stable_mosaic.version = 11 : i64} {
  func.func @_pe_dropout_kernel(%arg0: i32, %arg1: memref<1xi32, #tpu.memory_space<smem>>, %arg2: memref<8x64xf32, #tpu.memory_space<vmem>>, %arg3: memref<8x32xf32, #tpu.memory_space<vmem>>, %arg4: memref<8x64xf32, #tpu.memory_space<vmem>>) attributes {dimension_semantics = [#tpu.dimension_semantics<parallel>], iteration_bounds = array<i64: 1>, scalar_prefetch = 1 : i64, scratch_operands = 0 : i64, tpu.core_type = #tpu.core_type<tc>, window_params = [{transform_indices = @transform_0, window_bounds = array<i64: 8, 64>}, {transform_indices = @transform_1, window_bounds = array<i64: 8, 32>}, {transform_indices = @transform_2, window_bounds = array<i64: 8, 64>}]} {
    %c0 = arith.constant 0 : index
    %c0_0 = arith.constant 0 : index
    %0 = vector.load %arg3[%c0, %c0_0] : memref<8x32xf32, #tpu.memory_space<vmem>>, vector<8x32xf32>
    %1 = tpu.concatenate %0, %0 in 1 : vector<8x32xf32>, vector<8x32xf32> -> vector<8x64xf32>
    %c0_1 = arith.constant 0 : index
    %c0_2 = arith.constant 0 : index
    %2 = vector.load %arg2[%c0_1, %c0_2] : memref<8x64xf32, #tpu.memory_space<vmem>>, vector<8x64xf32>
    %3 = arith.addf %2, %1 : vector<8x64xf32>
    %c0_3 = arith.constant 0 : index
    %c0_4 = arith.constant 0 : index
    %4 = vector.load %arg4[%c0_3, %c0_4] : memref<8x64xf32, #tpu.memory_space<vmem>>, vector<8x64xf32>
    tpu.vector_store %arg4[%c0_3, %c0_4], %3 {strides = array<i32>} : memref<8x64xf32, #tpu.memory_space<vmem>>, vector<8x64xf32>,
    return
  }
  func.func @transform_0(%arg0: i32, %arg1: memref<1xi32, #tpu.memory_space<smem>>) -> (i32, i32) {
    %c0_i32 = arith.constant 0 : i32
    %c0_i32_0 = arith.constant 0 : i32
    return %arg0, %c0_i32 : i32, i32
  }
  func.func @transform_1(%arg0: i32, %arg1: memref<1xi32, #tpu.memory_space<smem>>) -> (i32, i32) {
    %c0_i32 = arith.constant 0 : i32
    %c0_i32_0 = arith.constant 0 : i32
    return %arg0, %c0_i32 : i32, i32
  }
  func.func @transform_2(%arg0: i32, %arg1: memref<1xi32, #tpu.memory_space<smem>>) -> (i32, i32) {
    %c0_i32 = arith.constant 0 : i32
    %c0_i32_0 = arith.constant 0 : i32
    return %arg0, %c0_i32 : i32, i32
  }
}

</mosaic_0001>

<bundles_post_ra>
// kernel: tpu_custom_call.1
= control target key start
LH: loop header
LB: loop body
LE: loop exit
PB: predicated region body
PF: predicated region fallthrough
CT: control target
= control target key end

     0   :  { %9 = vsyncpa [#allocation5], 0  ;;  %s186_s0 = inlined_call_operand.<no memory space> [shape: s32[1], index: 0, kind: input, shape index: {}]   ;;  %s187_s1 = inlined_call_operand.hbm [shape: f32[8,64], index: 1, kind: input, shape index: {}]   ;;  %s188_s2 = inlined_call_operand.hbm [shape: f32[8,32], index: 2, kind: input, shape index: {}]   ;;  %s189_s3 = inlined_call_operand.hbm [shape: f32[8,64], index: 3, kind: output, shape index: {}]  }
   0x1   :  { %10 = vsyncpa [#allocation8], 0 }
   0x2   :  { %11 = vsyncpa [#allocation6], 0  ;;  %s17_s14 = sshll.u32 %s187_s1, 4  ;;  %s153_s15 = smov [#allocation4]   ;;  %s18_s14 = int_to_ptr.hbm [resolvable:$true] %s17_s14 }
   0x3   :  { %s19_s16 = sshll.u32 %s153_s15, 4  ;;  %s28_s18 = sshll.u32 %s188_s2, 4  ;;  %s20_s16 = int_to_ptr.vmem [resolvable:$true] %s19_s16  ;;  %s29_s18 = int_to_ptr.hbm [resolvable:$true] %s28_s18 }
   0x4   :  { %22 = dma.hbm_to_vmem [thread:$0]  %s18_s14, 128, %s20_s16, [#allocation5]  }
   0x5   :  { %s154_s19 = smov [#allocation7]  }
   0x6   :  { %s30_s20 = sshll.u32 %s154_s19, 4  ;;  %s31_s20 = int_to_ptr.vmem [resolvable:$true] %s30_s20 }
   0x7   :  { %33 = dma.hbm_to_vmem [thread:$0]  %s29_s18, 128, %s31_s20, [#allocation8]  }
   0x8   :  { %147 = dma.done.wait [#allocation5], 128  }
   0x9   :  { %148 = vsyncadd [#allocation5], 4294967168 }
   0xa   :  { %149 = dma.done.wait [#allocation8], 128  }
   0xb   :  { %150 = vsyncadd [#allocation8], 4294967168  ;;  %v42_v0 = vld [vmem:[#allocation7] sm:$0xff]  ;;  %s155_s1 = smov 32   ;;  %vm47_vm0 = vcmask 261120   ;;  %v49_v1 = vld [vmem:[#allocation4] sm:$0xff] }
   0xc   :  { %44 = vrot.lane.b32.xlu0 %v42_v0, %s155_s1  ;;  %s156_s21 = smov [#allocation9]   ;;  %s60_s2 = sshll.u32 %s189_s3, 4  ;;  %vm51_vm1 = vcmask 523264   ;;  %s61_s2 = int_to_ptr.hbm [resolvable:$true] %s60_s2 }
   0xd   :  { %s58_s22 = sshll.u32 %s156_s21, 4  ;;  %s59_s22 = int_to_ptr.vmem [resolvable:$true] %s58_s22 }
  0x7e   :  { %v45_v2 = vpop.permute.xlu0 %44 }
  0x7f   :  { %v48_v3 = vsel %vm47_vm0, %v42_v0, %v45_v2 }
  0x80   :  { %v50_v4 = vadd.f32 %v49_v1, %v48_v3 }
  0x82   :  { %52 = vst.msk [vmem:[#allocation9] sm:$0xff] %vm51_vm1, %v50_v4 }
  0x83   :  { %63 = dma.vmem_to_hbm [thread:$0]  %s59_s22, 128, %s61_s2, [#allocation6]  }
  0x84   :  { %151 = dma.done.wait [#allocation6], 128  }
  0x85   :  { %152 = vsyncadd [#allocation6], 4294967168 }
  0x86   :  { %68 = vsyncpa [#allocation5], 1 }
  0x87   :  { %69 = vsyncpa [#allocation8], 1 }
  0x88   :  { %70 = vsyncpa [#allocation6], 1 }

</bundles_post_ra>
